<compile_context>
chip_gen: v6e
topology: v6e:2x2x1
jax: 0.10.0
libtpu: 0.0.40
codegen_flags: <defaults>
</compile_context>

<pallas_src>
import functools

import jax
import jax.numpy as jnp
from jax.experimental import pallas as pl
from jax.experimental.pallas import tpu as pltpu


def _round_up(a, b):
    return (a + b - 1) // b * b


# ---------------------------------------------------------------------------
# Kernel
# ---------------------------------------------------------------------------
def highway_kernel(x_ref, w_ref, b_ref, o_ref, *, n_layers, size_p):
    # x_ref: (tm, size_p)                  row tile of the activation (io dtype)
    # w_ref: (n_layers, size_p, 2*size_p)  weights, columns = [linear | gate]
    # b_ref: (n_layers, 1, 2*size_p)       f32 biases, same column layout
    x = x_ref[...].astype(jnp.float32)           # f32 carry across layers
    for i in range(n_layers):                    # static, unrolled layer loop
        w = w_ref[i]                             # (size_p, 2*size_p)
        b = b_ref[i]                             # (1, 2*size_p) f32
        # One wide MXU matmul per layer (fused linear+gate), f32 accumulation.
        y = jnp.dot(x.astype(w.dtype), w,
                    preferred_element_type=jnp.float32) + b
        lin = y[:, :size_p]
        g = y[:, size_p:]
        # sigmoid(g) == 0.5*tanh(0.5*g) + 0.5  -> tanh runs on the EUP slot.
        gate = 0.5 * jnp.tanh(0.5 * g) + 0.5
        # x = gate*relu(lin) + (1-gate)*x  ==  x + gate*(relu(lin) - x)
        x = x + gate * (jnp.maximum(lin, 0.0) - x)
    o_ref[...] = x.astype(o_ref.dtype)


# ---------------------------------------------------------------------------
# One-time capability probe: single-buffered constant weight blocks
# ---------------------------------------------------------------------------
@functools.lru_cache(maxsize=None)
def _weight_pipeline_mode():
    """Return pl.Buffered(1) if this JAX/Mosaic accepts single-buffered
    constant blocks, else None.  Compile-only probe, memoized (runs once)."""
    if not hasattr(pl, "Buffered"):
        return None

    def _copy(a_ref, o_ref):
        o_ref[...] = a_ref[...]

    try:
        probe = pl.pallas_call(
            _copy,
            out_shape=jax.ShapeDtypeStruct((8, 128), jnp.float32),
            grid=(1,),
            in_specs=[pl.BlockSpec((8, 128), lambda i: (0, 0),
                                   pipeline_mode=pl.Buffered(1))],
            out_specs=pl.BlockSpec((8, 128), lambda i: (0, 0)),
        )
        jax.jit(probe).lower(
            jax.ShapeDtypeStruct((8, 128), jnp.float32)).compile()
        return pl.Buffered(1)
    except Exception:
        return None


# ---------------------------------------------------------------------------
# Row-tile selection
# ---------------------------------------------------------------------------
def _choose_row_tile(n_rows, size_p):
    """Largest row tile (multiple of 16 for bf16 sublane packing), capped for
    VMEM friendliness, keeping row-padding waste <= ~10%."""
    min_tile = 16
    cap = 512 if size_p <= 256 else 256
    if n_rows <= cap:
        return _round_up(n_rows, min_tile)
    for tm in range(cap, min_tile - 1, -min_tile):
        waste = _round_up(n_rows, tm) - n_rows
        if waste * 10 <= n_rows:                 # <= 10% padded rows
            return tm
    return min_tile


# ---------------------------------------------------------------------------
# pallas_call wrapper
# ---------------------------------------------------------------------------
def _pallas_highway(x2, w_cat, b_cat, *, tm, size_p, n_layers):
    n_rows_p = x2.shape[0]
    grid = (n_rows_p // tm,)                     # exact: rows pre-padded to tm

    io_bytes = jnp.dtype(x2.dtype).itemsize
    w_bytes = jnp.dtype(w_cat.dtype).itemsize
    weight_bytes = w_cat.size * w_bytes + b_cat.size * 4
    # Single-buffer the (grid-constant) weights only when it actually matters.
    weight_mode = _weight_pipeline_mode() if weight_bytes > (4 << 20) else None
    weight_bufs = 1 if weight_mode is not None else 2

    def const_spec(shape):
        idx_map = lambda i: (0,) * len(shape)
        if weight_mode is None:
            return pl.BlockSpec(shape, idx_map)
        return pl.BlockSpec(shape, idx_map, pipeline_mode=weight_mode)

    # Explicit VMEM accounting: double-buffered in/out activation blocks,
    # resident weight/bias blocks, f32 carry + widened y temporaries.
    budget = (4 * tm * size_p * io_bytes
              + weight_bufs * weight_bytes
              + tm * size_p * 4 + tm * 2 * size_p * 4)
    vmem_limit = int(max(32 << 20, min(64 << 20, 2 * budget)))

    flops = 2 * n_layers * n_rows_p * size_p * (2 * size_p)
    transcendentals = n_layers * n_rows_p * size_p           # tanh
    bytes_accessed = int(2 * x2.size * io_bytes
                         + w_cat.size * w_bytes + b_cat.size * 4)

    return pl.pallas_call(
        functools.partial(highway_kernel, n_layers=n_layers, size_p=size_p),
        out_shape=jax.ShapeDtypeStruct((n_rows_p, size_p), x2.dtype),
        grid_spec=pltpu.PrefetchScalarGridSpec(
            num_scalar_prefetch=0,
            grid=grid,
            in_specs=[
                pl.BlockSpec((tm, size_p), lambda i: (i, 0)),
                const_spec((n_layers, size_p, 2 * size_p)),
                const_spec((n_layers, 1, 2 * size_p)),
            ],
            out_specs=pl.BlockSpec((tm, size_p), lambda i: (i, 0)),
        ),
        input_output_aliases={0: 0},             # reuse padded x buffer as out
        compiler_params=pltpu.CompilerParams(
            dimension_semantics=("parallel",),
            vmem_limit_bytes=vmem_limit),
        cost_estimate=pl.CostEstimate(
            flops=flops,
            transcendentals=transcendentals,
            bytes_accessed=bytes_accessed),
    )(x2, w_cat, b_cat)


# ---------------------------------------------------------------------------
# Public API
# ---------------------------------------------------------------------------
def prepare_highway_params(wl, bl, wg, bg, *, use_bf16=True):
    """One-time weight prep: (out,in)->(in,out), zero-pad feature dims to a
    multiple of 128, fuse [linear | gate] along the output dim.  Cache and
    reuse the result across forward calls."""
    n_layers, size, _ = wl.shape
    size_p = _round_up(size, 128)

    def prep_w(w):
        w_t = jnp.transpose(w, (0, 2, 1))
        return jnp.pad(w_t, ((0, 0), (0, size_p - size), (0, size_p - size)))

    w_cat = jnp.concatenate([prep_w(wl), prep_w(wg)], axis=2)
    w_cat = w_cat.astype(jnp.bfloat16 if use_bf16 else jnp.float32)

    def prep_b(b):
        return jnp.pad(b, ((0, 0), (0, size_p - size)))

    b_cat = jnp.concatenate([prep_b(bl), prep_b(bg)], axis=1)
    b_cat = b_cat.reshape(n_layers, 1, 2 * size_p).astype(jnp.float32)
    return w_cat, b_cat


@jax.jit
def highway_apply(x, w_cat, b_cat):
    """x: (batch, seq, size); w_cat/b_cat from prepare_highway_params."""
    batch, seq, size = x.shape
    n_layers, size_p, _ = w_cat.shape
    # Stream activations at the weight precision (bf16 by default); the carry
    # and all elementwise math remain f32 inside the kernel.
    io_dtype = jnp.bfloat16 if w_cat.dtype == jnp.bfloat16 else jnp.float32

    n_rows = batch * seq
    tm = _choose_row_tile(n_rows, size_p)
    n_rows_p = _round_up(n_rows, tm)
    # Ensure >= 2 grid steps when possible so "parallel" shards across both
    # v7x TensorCores (no-op cost on single-TC v5e/v6e).
    if n_rows_p == tm and tm >= 32:
        tm = _round_up(-(-n_rows // 2), 16)
        n_rows_p = _round_up(n_rows, tm)

    x2 = x.reshape(n_rows, size).astype(io_dtype)
    x2 = jnp.pad(x2, ((0, n_rows_p - n_rows), (0, size_p - size)))

    out = _pallas_highway(x2, w_cat, b_cat,
                          tm=tm, size_p=size_p, n_layers=n_layers)
    return out[:n_rows, :size].reshape(batch, seq, size).astype(x.dtype)


def highway_forward(x, wl, bl, wg, bg, *, use_bf16=True):
    """Convenience wrapper (preps weights per call).  For repeated calls,
    prepare once with prepare_highway_params and call highway_apply."""
    w_cat, b_cat = prepare_highway_params(wl, bl, wg, bg, use_bf16=use_bf16)
    return highway_apply(x, w_cat, b_cat)


def highway_reference(x, wl, bl, wg, bg):
    n_layers = wl.shape[0]
    for i in range(n_layers):
        lin = x @ wl[i].T + bl[i]
        gate = jax.nn.sigmoid(x @ wg[i].T + bg[i])
        x = gate * jnp.maximum(lin, 0.0) + (1.0 - gate) * x
    return x


if __name__ == "__main__":
    key = jax.random.PRNGKey(0)
    batch, seq, size = 2, 8, 32
    layer_num = 2

    k_x, k_wl, k_bl, k_wg, k_bg = jax.random.split(key, 5)
    x = jax.random.normal(k_x, (batch, seq, size), dtype=jnp.float32)

    # Deterministic init matching nn.Linear shapes (out, in).
    bound = 1.0 / (size ** 0.5)
    wl = jax.random.uniform(k_wl, (layer_num, size, size),
                            minval=-bound, maxval=bound, dtype=jnp.float32)
    bl = jax.random.uniform(k_bl, (layer_num, size),
                            minval=-bound, maxval=bound, dtype=jnp.float32)
    wg = jax.random.uniform(k_wg, (layer_num, size, size),
                            minval=-bound, maxval=bound, dtype=jnp.float32)
    bg = jax.random.uniform(k_bg, (layer_num, size),
                            minval=-bound, maxval=bound, dtype=jnp.float32)
    # NOTE: the PyTorch module accepts gate_bias=-2 but never applies it, so we
    # match that behavior (no special gate-bias init).

    ref = highway_reference(x, wl, bl, wg, bg)

    # Default (bf16-streamed) path: prepare once, apply.
    w_cat, b_cat = prepare_highway_params(wl, bl, wg, bg, use_bf16=True)
    out = jax.block_until_ready(highway_apply(x, w_cat, b_cat))
    assert out.shape == (batch, seq, size)
    max_err = jnp.max(jnp.abs(out - ref))
    assert jnp.allclose(out, ref, atol=3e-2, rtol=3e-2), (
        f"bf16 path mismatch vs reference (max abs err {max_err})")

    # Full-f32 escape hatch (strict parity path).
    out_f32 = jax.block_until_ready(highway_forward(x, wl, bl, wg, bg,
                                                    use_bf16=False))
    max_err_f32 = jnp.max(jnp.abs(out_f32 - ref))
    assert jnp.allclose(out_f32, ref, atol=3e-2, rtol=3e-2), (
        f"f32 path mismatch vs reference (max abs err {max_err_f32})")

    print("KERNEL_OK")
</pallas_src>

<mosaic_0001>
module attributes {stable_mosaic.version = 11 : i64} {
  func.func @highway_kernel(%arg0: i32, %arg1: memref<16x128xbf16, #tpu.memory_space<vmem>>, %arg2: memref<2x128x256xbf16, #tpu.memory_space<vmem>>, %arg3: memref<2x1x256xf32, #tpu.memory_space<vmem>>, %arg4: memref<16x128xbf16, #tpu.memory_space<vmem>>) attributes {dimension_semantics = [#tpu.dimension_semantics<parallel>], iteration_bounds = array<i64: 1>, scalar_prefetch = 0 : i64, scratch_operands = 0 : i64, tpu.core_type = #tpu.core_type<tc>, window_params = [{transform_indices = @transform_0, window_bounds = array<i64: 16, 128>}, {pipeline_mode = #tpu.pipeline_mode<synchronous>, transform_indices = @transform_1, window_bounds = array<i64: 2, 128, 256>}, {pipeline_mode = #tpu.pipeline_mode<synchronous>, transform_indices = @transform_2, window_bounds = array<i64: 2, 1, 256>}, {transform_indices = @transform_3, window_bounds = array<i64: 16, 128>}]} {
    %c0 = arith.constant 0 : index
    %c0_0 = arith.constant 0 : index
    %0 = vector.load %arg1[%c0, %c0_0] : memref<16x128xbf16, #tpu.memory_space<vmem>>, vector<16x128xbf16>
    %1 = arith.extf %0 : vector<16x128xbf16> to vector<16x128xf32>
    %c0_1 = arith.constant 0 : index
    %c0_2 = arith.constant 0 : index
    %c0_3 = arith.constant 0 : index
    %2 = vector.load %arg2[%c0_1, %c0_2, %c0_3] : memref<2x128x256xbf16, #tpu.memory_space<vmem>>, vector<1x128x256xbf16>
    %3 = vector.shape_cast %2 : vector<1x128x256xbf16> to vector<128x256xbf16>
    %c0_4 = arith.constant 0 : index
    %c0_5 = arith.constant 0 : index
    %c0_6 = arith.constant 0 : index
    %4 = vector.load %arg3[%c0_4, %c0_5, %c0_6] : memref<2x1x256xf32, #tpu.memory_space<vmem>>, vector<1x1x256xf32>
    %5 = vector.shape_cast %4 : vector<1x1x256xf32> to vector<1x256xf32>
    %6 = arith.truncf %1 : vector<16x128xf32> to vector<16x128xbf16>
    %cst = arith.constant dense<0.000000e+00> : vector<16x256xf32>
    %7 = tpu.matmul %6, %3, %cst {dimension_numbers = #tpu.dot_dimension_numbers<[1], [0], [0], [1], [0, 0, 1, 1], [], []>} : vector<16x128xbf16>, vector<128x256xbf16>, vector<16x256xf32> -> vector<16x256xf32>
    %8 = vector.broadcast %5 : vector<1x256xf32> to vector<16x256xf32>
    %9 = arith.addf %7, %8 : vector<16x256xf32>
    %10 = vector.extract_strided_slice %9 {offsets = [0, 0], sizes = [16, 128], strides = [1, 1]} : vector<16x256xf32> to vector<16x128xf32>
    %11 = vector.extract_strided_slice %9 {offsets = [0, 128], sizes = [16, 128], strides = [1, 1]} : vector<16x256xf32> to vector<16x128xf32>
    %cst_7 = arith.constant 5.000000e-01 : f32
    %12 = vector.broadcast %cst_7 : f32 to vector<16x128xf32>
    %13 = arith.mulf %12, %11 : vector<16x128xf32>
    %14 = math.tanh %13 : vector<16x128xf32>
    %cst_8 = arith.constant 5.000000e-01 : f32
    %15 = vector.broadcast %cst_8 : f32 to vector<16x128xf32>
    %16 = arith.mulf %15, %14 : vector<16x128xf32>
    %cst_9 = arith.constant 5.000000e-01 : f32
    %17 = vector.broadcast %cst_9 : f32 to vector<16x128xf32>
    %18 = arith.addf %16, %17 : vector<16x128xf32>
    %cst_10 = arith.constant 0.000000e+00 : f32
    %19 = vector.broadcast %cst_10 : f32 to vector<16x128xf32>
    %20 = arith.maximumf %10, %19 : vector<16x128xf32>
    %21 = arith.subf %20, %1 : vector<16x128xf32>
    %22 = arith.mulf %18, %21 : vector<16x128xf32>
    %23 = arith.addf %1, %22 : vector<16x128xf32>
    %c1 = arith.constant 1 : index
    %c0_11 = arith.constant 0 : index
    %c0_12 = arith.constant 0 : index
    %24 = vector.load %arg2[%c1, %c0_11, %c0_12] : memref<2x128x256xbf16, #tpu.memory_space<vmem>>, vector<1x128x256xbf16>
    %25 = vector.shape_cast %24 : vector<1x128x256xbf16> to vector<128x256xbf16>
    %c1_13 = arith.constant 1 : index
    %c0_14 = arith.constant 0 : index
    %c0_15 = arith.constant 0 : index
    %26 = vector.load %arg3[%c1_13, %c0_14, %c0_15] : memref<2x1x256xf32, #tpu.memory_space<vmem>>, vector<1x1x256xf32>
    %27 = vector.shape_cast %26 : vector<1x1x256xf32> to vector<1x256xf32>
    %28 = arith.truncf %23 : vector<16x128xf32> to vector<16x128xbf16>
    %cst_16 = arith.constant dense<0.000000e+00> : vector<16x256xf32>
    %29 = tpu.matmul %28, %25, %cst_16 {dimension_numbers = #tpu.dot_dimension_numbers<[1], [0], [0], [1], [0, 0, 1, 1], [], []>} : vector<16x128xbf16>, vector<128x256xbf16>, vector<16x256xf32> -> vector<16x256xf32>
    %30 = vector.broadcast %27 : vector<1x256xf32> to vector<16x256xf32>
    %31 = arith.addf %29, %30 : vector<16x256xf32>
    %32 = vector.extract_strided_slice %31 {offsets = [0, 0], sizes = [16, 128], strides = [1, 1]} : vector<16x256xf32> to vector<16x128xf32>
    %33 = vector.extract_strided_slice %31 {offsets = [0, 128], sizes = [16, 128], strides = [1, 1]} : vector<16x256xf32> to vector<16x128xf32>
    %cst_17 = arith.constant 5.000000e-01 : f32
    %34 = vector.broadcast %cst_17 : f32 to vector<16x128xf32>
    %35 = arith.mulf %34, %33 : vector<16x128xf32>
    %36 = math.tanh %35 : vector<16x128xf32>
    %cst_18 = arith.constant 5.000000e-01 : f32
    %37 = vector.broadcast %cst_18 : f32 to vector<16x128xf32>
    %38 = arith.mulf %37, %36 : vector<16x128xf32>
    %cst_19 = arith.constant 5.000000e-01 : f32
    %39 = vector.broadcast %cst_19 : f32 to vector<16x128xf32>
    %40 = arith.addf %38, %39 : vector<16x128xf32>
    %cst_20 = arith.constant 0.000000e+00 : f32
    %41 = vector.broadcast %cst_20 : f32 to vector<16x128xf32>
    %42 = arith.maximumf %32, %41 : vector<16x128xf32>
    %43 = arith.subf %42, %23 : vector<16x128xf32>
    %44 = arith.mulf %40, %43 : vector<16x128xf32>
    %45 = arith.addf %23, %44 : vector<16x128xf32>
    %46 = arith.truncf %45 : vector<16x128xf32> to vector<16x128xbf16>
    %c0_21 = arith.constant 0 : index
    %c0_22 = arith.constant 0 : index
    %47 = vector.load %arg4[%c0_21, %c0_22] : memref<16x128xbf16, #tpu.memory_space<vmem>>, vector<16x128xbf16>
    tpu.vector_store %arg4[%c0_21, %c0_22], %46 {strides = array<i32>} : memref<16x128xbf16, #tpu.memory_space<vmem>>, vector<16x128xbf16>,
    return
  }
  func.func @transform_0(%arg0: i32) -> (i32, i32) {
    %c0_i32 = arith.constant 0 : i32
    %c0_i32_0 = arith.constant 0 : i32
    return %arg0, %c0_i32 : i32, i32
  }
  func.func @transform_1(%arg0: i32) -> (i32, i32, i32) {
    %c0_i32 = arith.constant 0 : i32
    %c0_i32_0 = arith.constant 0 : i32
    %c0_i32_1 = arith.constant 0 : i32
    %c0_i32_2 = arith.constant 0 : i32
    return %c0_i32, %c0_i32_0, %c0_i32_1 : i32, i32, i32
  }
  func.func @transform_2(%arg0: i32) -> (i32, i32, i32) {
    %c0_i32 = arith.constant 0 : i32
    %c0_i32_0 = arith.constant 0 : i32
    %c0_i32_1 = arith.constant 0 : i32
    %c0_i32_2 = arith.constant 0 : i32
    return %c0_i32, %c0_i32_0, %c0_i32_1 : i32, i32, i32
  }
  func.func @transform_3(%arg0: i32) -> (i32, i32) {
    %c0_i32 = arith.constant 0 : i32
    %c0_i32_0 = arith.constant 0 : i32
    return %arg0, %c0_i32 : i32, i32
  }
}

</mosaic_0001>

<bundles_post_ra>
// kernel: highway_apply.1
= control target key start
LH: loop header
LB: loop body
LE: loop exit
PB: predicated region body
PF: predicated region fallthrough
CT: control target
= control target key end

     0   :  { %8 = vsyncpa [#allocation3], 0  ;;  %s518_s12 = smov [#allocation2]   ;;  %s562_s0 = inlined_call_operand.vmem [shape: bf16[16,128], index: 0, kind: input, shape index: {}, may-alias: {0,3}]   ;;  %s563_s1 = inlined_call_operand.hbm [shape: bf16[2,128,256], index: 1, kind: input, shape index: {}]   ;;  %s564_s2 = inlined_call_operand.vmem [shape: f32[2,1,256], index: 2, kind: input, shape index: {}]   ;;  %s565_s3 = inlined_call_operand.vmem [shape: bf16[16,128], index: 3, kind: output, shape index: {}, may-alias: {0,3}]  }
   0x1   :  { %s16_s13 = sshll.u32 %s518_s12, 4  ;;  %s17_s13 = int_to_ptr.vmem [resolvable:$true] %s16_s13 }
   0x2   :  { %s504_s14 = scalar_lea.vmem %s17_s13, 4096  ;;  %p509_p1 = scmp.lt.s32.totalorder %s17_s13, %s17_s13 }
   0x3   :  { %p505_p0 = scmp.ne.s32.totalorder %s17_s13, %s504_s14  ;;  %p510_p2 = scmp.lt.s32.totalorder %s504_s14, %s504_s14 }
   0x5   :  { %p511_p3 = por %p510_p2, %p509_p1 }
   0x7   :  { %p512_p4 = pnand %p511_p3, %p505_p0 }
   0x9   :  { %515 = shalt.err (!%p512_p4)
}
   0xa   :  { %s519_s15 = smov 128   ;;  %s520_s16 = smov 8  }
   0xb   :  { %22 = dma.hbm_to_vmem [thread:$0]  %s563_s1, 4096, %s17_s13, [#allocation3], %s519_s15, %s519_s15, %s520_s16  }
   0xc   :  { %516 = dma.done.wait [#allocation3], 4096  }
   0xd   :  { %517 = vsyncadd [#allocation3], 4294963200  ;;  %v521_v0 = vmov 0   ;;  %v438_v1 = vld [vmem:[#allocation2 + $0x74] ss:$8 sps:$4 sm:$0xff]   ;;  %v548_v17 = vld [vmem:[%s562_s0] sm:$0xff]   ;;  %v51_v34 = vlaneseq }
   0xe   :  { %179 = vmatprep.mubr.bf16.mxu0 %v521_v0  ;;  %349 = vmatprep.mubr.bf16.mxu1 %v521_v0  ;;  %v440_v2 = vld [vmem:[#allocation2 + $0x70] ss:$8 sps:$4 sm:$0xff]   ;;  %v441_v3 = vld [vmem:[#allocation2 + $0x64] ss:$8 sps:$4 sm:$0xff]   ;;  %v443_v4 = vld [vmem:[#allocation2 + $0x60] ss:$8 sps:$4 sm:$0xff]   ;;  %v31_v52 = vunpack.c.l.bf16 %v548_v17  ;;  %v32_v56 = vunpack.c.h.bf16 %v548_v17 }
   0xf   :  { %147 = vmatprep.subr.bf16.mxu0 %v438_v1  ;;  %v444_v5 = vld [vmem:[#allocation2 + $0x54] ss:$8 sps:$4 sm:$0xff]   ;;  %v446_v6 = vld [vmem:[#allocation2 + $0x50] ss:$8 sps:$4 sm:$0xff]   ;;  %v447_v7 = vld [vmem:[#allocation2 + $0x44] ss:$8 sps:$4 sm:$0xff]  }
  0x10   :  { %148 = vmatpush1.bf16.msra.mxu0 %v440_v2  ;;  %v449_v8 = vld [vmem:[#allocation2 + $0x40] ss:$8 sps:$4 sm:$0xff]   ;;  %v450_v9 = vld [vmem:[#allocation2 + $0x34] ss:$8 sps:$4 sm:$0xff]   ;;  %v452_v10 = vld [vmem:[#allocation2 + $0x30] ss:$8 sps:$4 sm:$0xff]  }
  0x11   :  { %149 = vmatprep.subr.bf16.mxu0 %v441_v3  ;;  %v453_v11 = vld [vmem:[#allocation2 + $0x24] ss:$8 sps:$4 sm:$0xff]   ;;  %v455_v12 = vld [vmem:[#allocation2 + $0x20] ss:$8 sps:$4 sm:$0xff]   ;;  %v456_v13 = vld [vmem:[#allocation2 + $0x14] ss:$8 sps:$4 sm:$0xff]  }
  0x12   :  { %v458_v14 = vld [vmem:[#allocation2 + $0x10] ss:$8 sps:$4 sm:$0xff]   ;;  %v459_v15 = vld [vmem:[#allocation2 + $0x4] ss:$8 sps:$4 sm:$0xff]   ;;  %v461_v16 = vld [vmem:[#allocation2] ss:$8 sps:$4 sm:$0xff]  }
  0x13   :  { %v463_v18 = vld [vmem:[#allocation2 + $0xf4] ss:$8 sps:$4 sm:$0xff]   ;;  %v465_v19 = vld [vmem:[#allocation2 + $0xf0] ss:$8 sps:$4 sm:$0xff]   ;;  %v466_v20 = vld [vmem:[#allocation2 + $0xe4] ss:$8 sps:$4 sm:$0xff]  }
  0x14   :  { %150 = vmatpush1.bf16.msra.mxu0 %v443_v4  ;;  %317 = vmatprep.subr.bf16.mxu1 %v463_v18  ;;  %v468_v21 = vld [vmem:[#allocation2 + $0xe0] ss:$8 sps:$4 sm:$0xff]   ;;  %v469_v22 = vld [vmem:[#allocation2 + $0xd4] ss:$8 sps:$4 sm:$0xff]   ;;  %v471_v23 = vld [vmem:[#allocation2 + $0xd0] ss:$8 sps:$4 sm:$0xff]  }
  0x15   :  { %151 = vmatprep.subr.bf16.mxu0 %v444_v5  ;;  %318 = vmatpush1.bf16.msra.mxu1 %v465_v19  ;;  %v472_v24 = vld [vmem:[#allocation2 + $0xc4] ss:$8 sps:$4 sm:$0xff]   ;;  %v474_v25 = vld [vmem:[#allocation2 + $0xc0] ss:$8 sps:$4 sm:$0xff]   ;;  %v475_v26 = vld [vmem:[#allocation2 + $0xb4] ss:$8 sps:$4 sm:$0xff]  }
  0x16   :  { %319 = vmatprep.subr.bf16.mxu1 %v466_v20  ;;  %v477_v27 = vld [vmem:[#allocation2 + $0xb0] ss:$8 sps:$4 sm:$0xff]   ;;  %v478_v28 = vld [vmem:[#allocation2 + $0xa4] ss:$8 sps:$4 sm:$0xff]   ;;  %v480_v29 = vld [vmem:[#allocation2 + $0xa0] ss:$8 sps:$4 sm:$0xff]  }
  0x17   :  { %v481_v30 = vld [vmem:[#allocation2 + $0x94] ss:$8 sps:$4 sm:$0xff]   ;;  %v483_v31 = vld [vmem:[#allocation2 + $0x90] ss:$8 sps:$4 sm:$0xff]   ;;  %v484_v32 = vld [vmem:[#allocation2 + $0x84] ss:$8 sps:$4 sm:$0xff]  }
  0x18   :  { %152 = vmatpush1.bf16.msra.mxu0 %v446_v6  ;;  %v486_v33 = vld [vmem:[#allocation2 + $0x80] ss:$8 sps:$4 sm:$0xff]   ;;  %v52_v35 = vshrl.u32 %v51_v34, 7 }
  0x19   :  { %153 = vmatprep.subr.bf16.mxu0 %v447_v7  ;;  %320 = vmatpush1.bf16.msra.mxu1 %v468_v21  ;;  %v49_v37 = vld [vmem:[%s564_s2] sm:$0x3]  ;;  %v408_v4 = vld [vmem:[%s564_s2 + $0x2] sm:$0x3] }
  0x1a   :  { %321 = vmatprep.subr.bf16.mxu1 %v469_v22  ;;  %v57_v36 = vsub.s32 1, %v52_v35  ;;  %v53_v46 = vsub.s32 0, %v52_v35 }
  0x1c   :  { %154 = vmatpush1.bf16.msra.mxu0 %v449_v8  ;;  %v58_v38 = vrot.slane %v49_v37, %v57_v36  ;;  %v54_v48 = vrot.slane %v49_v37, %v53_v46  ;;  %v234_v5 = vrot.slane %v408_v4, %v57_v36 }
  0x1d   :  { %155 = vmatprep.subr.bf16.mxu0 %v450_v9  ;;  %322 = vmatpush1.bf16.msra.mxu1 %v471_v23 }
  0x1e   :  { %323 = vmatprep.subr.bf16.mxu1 %v472_v24 }
  0x20   :  { %156 = vmatpush1.bf16.msra.mxu0 %v452_v10 }
  0x21   :  { %157 = vmatprep.subr.bf16.mxu0 %v453_v11  ;;  %324 = vmatpush1.bf16.msra.mxu1 %v474_v25 }
  0x22   :  { %325 = vmatprep.subr.bf16.mxu1 %v475_v26 }
  0x24   :  { %158 = vmatpush1.bf16.msra.mxu0 %v455_v12 }
  0x25   :  { %159 = vmatprep.subr.bf16.mxu0 %v456_v13  ;;  %326 = vmatpush1.bf16.msra.mxu1 %v477_v27 }
  0x26   :  { %327 = vmatprep.subr.bf16.mxu1 %v478_v28 }
  0x28   :  { %160 = vmatpush1.bf16.msra.mxu0 %v458_v14  ;;  %v230_v14 = vrot.slane %v408_v4, %v53_v46 }
  0x29   :  { %161 = vmatprep.subr.bf16.mxu0 %v459_v15  ;;  %328 = vmatpush1.bf16.msra.mxu1 %v480_v29 }
  0x2a   :  { %329 = vmatprep.subr.bf16.mxu1 %v481_v30 }
  0x2c   :  { %162 = vmatpush1.bf16.msra.mxu0 %v461_v16 }
  0x2d   :  { %330 = vmatpush1.bf16.msra.mxu1 %v483_v31 }
  0x2e   :  { %331 = vmatprep.subr.bf16.mxu1 %v484_v32 }
  0x2f   :  { %180 = vmatmul.mubr.bf16.vlgmr.msra.gmra.mxu0 %v548_v17 }
  0x31   :  { %332 = vmatpush1.bf16.msra.mxu1 %v486_v33 }
  0xef   :  { %v181_v39 = vpop.f32.mrf.mxu0 }
  0xf0   :  { %v182_v49 = vadd.f32 %v181_v39, %v54_v48 }
  0xf1   :  { %v183_v40 = vpop.f32.mrf.mxu0 }
  0xf2   :  { %v184_v41 = vadd.f32 %v183_v40, %v58_v38  ;;  %v198_v53 = vmax.f32 %v182_v49, 0.0 }
  0xf3   :  { %v185_v42 = vpop.f32.mrf.mxu0 }
  0xf4   :  { %v190_v43 = vmul.f32 0.5, %v184_v41  ;;  %v186_v50 = vadd.f32 %v185_v42, %v54_v48  ;;  %v200_v59 = vsub.f32 %v198_v53, %v31_v52 }
  0xf5   :  { %v187_v44 = vpop.f32.mrf.mxu0 }
  0xf6   :  { %488 = vtanh.f32 %v190_v43  ;;  %v188_v45 = vadd.f32 %v187_v44, %v58_v38  ;;  %v199_v57 = vmax.f32 %v186_v50, 0.0 }
  0xf8   :  { %v191_v47 = vmul.f32 0.5, %v188_v45  ;;  %v201_v62 = vsub.f32 %v199_v57, %v32_v56 }
  0xfa   :  { %490 = vtanh.f32 %v191_v47 }
 0x103   :  { %v489_v51 = vpop.eup %488 }
 0x104   :  { %v194_v54 = vmul.f32 0.5, %v489_v51 }
 0x106   :  { %v196_v55 = vadd.f32 0.5, %v194_v54 }
 0x107   :  { %v491_v58 = vpop.eup %490 }
 0x108   :  { %v195_v60 = vmul.f32 0.5, %v491_v58  ;;  %v202_v61 = vmul.f32 %v200_v59, %v196_v55 }
 0x10a   :  { %v197_v63 = vadd.f32 0.5, %v195_v60  ;;  %v204_v1 = vadd.f32 %v202_v61, %v31_v52 }
 0x10c   :  { %v203_v0 = vmul.f32 %v201_v62, %v197_v63 }
 0x10e   :  { %v205_v2 = vadd.f32 %v203_v0, %v32_v56 }
 0x110   :  { %v225_v3 = vpack.c.bf16 %v205_v2, %v204_v1 }
 0x112   :  { %350 = vmatmul.mubr.bf16.vlgmr.msra.gmra.mxu1 %v225_v3 }
 0x1d2   :  { %v351_v6 = vpop.f32.mrf.mxu1 }
 0x1d3   :  { %v352_v15 = vadd.f32 %v351_v6, %v230_v14 }
 0x1d4   :  { %v353_v7 = vpop.f32.mrf.mxu1 }
 0x1d5   :  { %v354_v8 = vadd.f32 %v353_v7, %v234_v5  ;;  %v368_v18 = vmax.f32 %v352_v15, 0.0 }
 0x1d6   :  { %v355_v9 = vpop.f32.mrf.mxu1 }
 0x1d7   :  { %v360_v10 = vmul.f32 0.5, %v354_v8  ;;  %v356_v16 = vadd.f32 %v355_v9, %v230_v14  ;;  %v370_v23 = vsub.f32 %v368_v18, %v204_v1 }
 0x1d8   :  { %v357_v11 = vpop.f32.mrf.mxu1 }
 0x1d9   :  { %492 = vtanh.f32 %v360_v10  ;;  %v358_v12 = vadd.f32 %v357_v11, %v234_v5  ;;  %v369_v21 = vmax.f32 %v356_v16, 0.0 }
 0x1db   :  { %v361_v13 = vmul.f32 0.5, %v358_v12  ;;  %v371_v26 = vsub.f32 %v369_v21, %v205_v2 }
 0x1dd   :  { %494 = vtanh.f32 %v361_v13 }
 0x1e6   :  { %v493_v17 = vpop.eup %492 }
 0x1e7   :  { %v364_v19 = vmul.f32 0.5, %v493_v17 }
 0x1e9   :  { %v366_v20 = vadd.f32 0.5, %v364_v19 }
 0x1ea   :  { %v495_v22 = vpop.eup %494 }
 0x1eb   :  { %v365_v24 = vmul.f32 0.5, %v495_v22  ;;  %v372_v25 = vmul.f32 %v370_v23, %v366_v20 }
 0x1ed   :  { %v367_v27 = vadd.f32 0.5, %v365_v24  ;;  %v374_v29 = vadd.f32 %v372_v25, %v204_v1 }
 0x1ef   :  { %v373_v28 = vmul.f32 %v371_v26, %v367_v27 }
 0x1f1   :  { %v375_v30 = vadd.f32 %v373_v28, %v205_v2 }
 0x1f3   :  { %v432_v31 = vpack.c.bf16 %v375_v30, %v374_v29 }
 0x1f5   :  { %433 = vst [vmem:[%s565_s3] sm:$0xff] %v432_v31  }
 0x1f6   :  { %390 = vsyncpa [#allocation3], 1 }

</bundles_post_ra>
